<compile_context>
chip_gen: v5e
topology: v5e:2x2
jax: 0.10.0
libtpu: 0.0.40
codegen_flags: <defaults>
</compile_context>

<pallas_src>
import functools

import jax
import jax.numpy as jnp
from jax import lax
from jax.experimental import pallas as pl
from jax.experimental.pallas import tpu as pltpu

LANE = 128
SUBLANE = 8


def _cdiv(a, b):
    return -(-a // b)


def _round_up(a, b):
    return _cdiv(a, b) * b


def _chip_config():
    """Trace-time chip detection.

    Returns (block_bytes_per_input, n_core_splits, use_core_parallel,
             vmem_limit_bytes).
    """
    try:
        kind = jax.devices()[0].device_kind.lower()
    except Exception:
        kind = ""
    if "v7" in kind or "7x" in kind:
        # 2 TensorCores, 3.2 TB/s HBM, 64 MiB physical VMEM per TC.
        return (4 << 20), 2, True, (48 << 20)
    if "v6" in kind:
        # 1 TensorCore, ~1.4 TB/s HBM, 128 MiB physical VMEM.
        return (4 << 20), 1, False, (64 << 20)
    if "v5p" in kind or "v4" in kind:
        # Megacore chips (not a tuning target): keep the simple single-split path.
        return (4 << 20), 1, False, (64 << 20)
    # v5e / unknown: slower HBM, slightly smaller blocks.
    return (3 << 20), 1, False, (64 << 20)


def _dice_kernel(yp_ref, yt_ref, inter_ref, total_ref, acc_i_ref, acc_t_ref, *,
                 block_rows, total_rows, needs_mask):
    """One grid step: accumulate per-lane partials of sum(yp*yt) and
    sum(yp)+sum(yt) into (8,128) f32 VMEM scratch; write the outputs once, on
    the last inner step."""
    i = pl.program_id(1)

    @pl.when(i == 0)
    def _init():
        acc_i_ref[...] = jnp.zeros_like(acc_i_ref)
        acc_t_ref[...] = jnp.zeros_like(acc_t_ref)

    # Sublane-reduction operand for the MXU: every row of (ones @ x) equals the
    # per-lane column sums of x, so the VPU only does casts + the elementwise
    # product while the otherwise-idle MXU does all the reduction adds.
    ones = jnp.ones((SUBLANE, block_rows), jnp.float32)

    def accumulate(yp, yt):
        acc_i_ref[...] += jnp.dot(ones, yp * yt, preferred_element_type=jnp.float32)
        acc_t_ref[...] += (jnp.dot(ones, yp, preferred_element_type=jnp.float32)
                           + jnp.dot(ones, yt, preferred_element_type=jnp.float32))

    if needs_mask:
        # Nominal (unclamped) block index; rows_left <= 0 for clamped duplicate
        # blocks, 0 < rows_left < block_rows for the ragged edge block.
        b = pl.program_id(0) * pl.num_programs(1) + i
        rows_left = total_rows - b * block_rows

        @pl.when(rows_left >= block_rows)
        def _full():  # interior block: no mask work at all (hot path)
            accumulate(yp_ref[...].astype(jnp.float32),
                       yt_ref[...].astype(jnp.float32))

        @pl.when(rows_left < block_rows)
        def _partial():  # ragged edge / clamped duplicate block (cold path)
            row_idx = lax.broadcasted_iota(jnp.int32, (block_rows, LANE), 0)
            keep = row_idx < rows_left
            yp = jnp.where(keep, yp_ref[...].astype(jnp.float32), 0.0)
            yt = jnp.where(keep, yt_ref[...].astype(jnp.float32), 0.0)
            accumulate(yp, yt)
    else:
        accumulate(yp_ref[...].astype(jnp.float32),
                   yt_ref[...].astype(jnp.float32))

    @pl.when(i == pl.num_programs(1) - 1)
    def _finalize():
        inter_ref[...] = acc_i_ref[...][None]
        total_ref[...] = acc_t_ref[...][None]


@functools.partial(jax.jit, static_argnames=("smooth",))
def dice_loss(y_pred, y_true, smooth=1.0):
    assert y_pred.shape == y_true.shape, "y_pred and y_true must have same shape"

    yp = jnp.ravel(y_pred)
    yt = jnp.ravel(y_true)
    if yp.dtype != yt.dtype:
        ct = jnp.promote_types(yp.dtype, yt.dtype)
        yp = yp.astype(ct)
        yt = yt.astype(ct)

    block_bytes, nsplit_cfg, core_parallel, vmem_limit = _chip_config()

    itemsize = jnp.dtype(yp.dtype).itemsize
    # Sublane multiple of the dtype's native (sub, 128) tile.
    sub = max(SUBLANE, 32 // max(itemsize, 1))

    n = yp.shape[0]
    rows = _cdiv(n, LANE)

    # Rows per block: chip-sized in bytes, capped in elements (so in-kernel f32
    # intermediates stay bounded for narrow dtypes), multiple of the dtype tile.
    target_rows = block_bytes // (LANE * itemsize)
    target_rows = min(target_rows, 8192)                 # <= 1M elements / block
    target_rows = max(sub, (target_rows // sub) * sub)
    if rows >= target_rows:
        block_rows = target_rows
        rows_padded = rows
    else:
        block_rows = _round_up(rows, sub)
        rows_padded = block_rows

    n_padded = rows_padded * LANE
    if n_padded != n:
        # Only hit for small or lane-ragged inputs; large lane-aligned inputs
        # skip this extra HBM pass entirely.
        # TODO(synk): large lane-ragged inputs still pay one pad pass here; a
        # flat 1-D kernel input would avoid it but 1-D VMEM layouts are not a
        # reliably efficient Mosaic path.
        yp = jnp.pad(yp, (0, n_padded - n))
        yt = jnp.pad(yt, (0, n_padded - n))
    yp2 = yp.reshape(rows_padded, LANE)
    yt2 = yt.reshape(rows_padded, LANE)

    nblocks = _cdiv(rows_padded, block_rows)
    # One reduction split per TensorCore (v7x only); single-core chips keep
    # nsplit=1 so no duplicate-block DMA / grid-wide masking is introduced.
    nsplit = nsplit_cfg if nblocks >= nsplit_cfg else 1
    ips = _cdiv(nblocks, nsplit)            # inner grid steps per split
    clamp = (nsplit * ips != nblocks)
    needs_mask = clamp or (rows_padded % block_rows != 0)

    def in_map(s, i):
        b = s * ips + i
        if clamp:
            b = jnp.minimum(b, nblocks - 1)  # keep the DMA in bounds; masked in-kernel
        return (b, 0)

    kernel = functools.partial(
        _dice_kernel,
        block_rows=block_rows,
        total_rows=rows_padded,
        needs_mask=needs_mask,
    )

    if nsplit > 1 and core_parallel:
        dim_sem = (pltpu.CORE_PARALLEL, pltpu.ARBITRARY)
    else:
        dim_sem = (pltpu.ARBITRARY, pltpu.ARBITRARY)

    out_shape = (
        jax.ShapeDtypeStruct((nsplit, SUBLANE, LANE), jnp.float32),  # sum(yp*yt)
        jax.ShapeDtypeStruct((nsplit, SUBLANE, LANE), jnp.float32),  # sum(yp)+sum(yt)
    )

    inter_p, total_p = pl.pallas_call(
        kernel,
        out_shape=out_shape,
        grid_spec=pltpu.PrefetchScalarGridSpec(
            num_scalar_prefetch=0,
            grid=(nsplit, ips),
            in_specs=[
                pl.BlockSpec((block_rows, LANE), in_map),
                pl.BlockSpec((block_rows, LANE), in_map),
            ],
            out_specs=[
                pl.BlockSpec((1, SUBLANE, LANE), lambda s, i: (s, 0, 0)),
                pl.BlockSpec((1, SUBLANE, LANE), lambda s, i: (s, 0, 0)),
            ],
            scratch_shapes=[
                pltpu.VMEM((SUBLANE, LANE), jnp.float32),   # intersection partial
                pltpu.VMEM((SUBLANE, LANE), jnp.float32),   # total partial
            ],
        ),
        compiler_params=pltpu.CompilerParams(
            dimension_semantics=dim_sem,
            vmem_limit_bytes=vmem_limit,
        ),
        cost_estimate=pl.CostEstimate(
            flops=5 * rows_padded * LANE,
            transcendentals=0,
            bytes_accessed=2 * rows_padded * LANE * itemsize
            + 2 * nsplit * SUBLANE * LANE * 4,
        ),
    )(yp2, yt2)

    # Every sublane row of the partials carries the same per-lane column sums
    # (ones has 8 identical rows), so row 0 of each split is the full partial.
    intersection = jnp.sum(inter_p[:, 0, :])
    total = jnp.sum(total_p[:, 0, :])
    smooth_f = jnp.float32(smooth)
    dsc = (2.0 * intersection + smooth_f) / (total + smooth_f)
    return jnp.float32(1.0) - dsc


def dice_loss_ref(y_pred, y_true, smooth=1.0):
    yp = y_pred.astype(jnp.float32)
    yt = y_true.astype(jnp.float32)
    inter = jnp.sum(yp * yt)
    dsc = (2.0 * inter + smooth) / (jnp.sum(yp) + jnp.sum(yt) + smooth)
    return 1.0 - dsc


if __name__ == "__main__":
    key = jax.random.PRNGKey(0)
    k1, k2, k3, k4 = jax.random.split(key, 4)

    # 1) Typical small segmentation input (NCHW): probabilities vs binary mask.
    shape = (2, 4, 16, 16)
    y_pred = jax.nn.sigmoid(jax.random.normal(k1, shape, dtype=jnp.float32))
    y_true = (jax.random.uniform(k2, shape) > 0.5).astype(jnp.float32)
    loss = jax.block_until_ready(dice_loss(y_pred, y_true))
    ref = dice_loss_ref(y_pred, y_true)
    assert jnp.allclose(loss, ref, rtol=1e-4, atol=1e-5), (loss, ref)

    # 2) Multi-block path: several full (unmasked) blocks plus one pl.when-gated
    #    ragged edge block (and the 2-core split / clamp path on v7x).
    shape2 = (2, 4, 500, 640)   # 2.56M elements, lane-aligned
    y_pred2 = jax.nn.sigmoid(jax.random.normal(k3, shape2, dtype=jnp.float32))
    y_true2 = (jax.random.uniform(k4, shape2) > 0.5).astype(jnp.float32)
    loss2 = jax.block_until_ready(dice_loss(y_pred2, y_true2))
    ref2 = dice_loss_ref(y_pred2, y_true2)
    assert jnp.allclose(loss2, ref2, rtol=1e-4, atol=1e-5), (loss2, ref2)

    # 3) Tiny lane-ragged input: exercises the wrapper zero-pad path.
    shape3 = (3, 5, 7)          # 105 elements
    y_pred3 = jax.nn.sigmoid(jax.random.normal(k1, shape3, dtype=jnp.float32))
    y_true3 = (jax.random.uniform(k2, shape3) > 0.5).astype(jnp.float32)
    loss3 = jax.block_until_ready(dice_loss(y_pred3, y_true3))
    ref3 = dice_loss_ref(y_pred3, y_true3)
    assert jnp.allclose(loss3, ref3, rtol=1e-4, atol=1e-5), (loss3, ref3)

    print("KERNEL_OK")
</pallas_src>

<mosaic_0001>
module attributes {stable_mosaic.version = 11 : i64} {
  func.func @_dice_kernel(%arg0: i32, %arg1: i32, %arg2: memref<16x128xf32, #tpu.memory_space<vmem>>, %arg3: memref<16x128xf32, #tpu.memory_space<vmem>>, %arg4: memref<1x8x128xf32, #tpu.memory_space<vmem>>, %arg5: memref<1x8x128xf32, #tpu.memory_space<vmem>>, %arg6: memref<8x128xf32, #tpu.memory_space<vmem>>, %arg7: memref<8x128xf32, #tpu.memory_space<vmem>>) attributes {dimension_semantics = [#tpu.dimension_semantics<arbitrary>, #tpu.dimension_semantics<arbitrary>], iteration_bounds = array<i64: 1, 1>, scalar_prefetch = 0 : i64, scratch_operands = 2 : i64, tpu.core_type = #tpu.core_type<tc>, window_params = [{transform_indices = @transform_0, window_bounds = array<i64: 16, 128>}, {transform_indices = @transform_1, window_bounds = array<i64: 16, 128>}, {transform_indices = @transform_2, window_bounds = array<i64: 1, 8, 128>}, {transform_indices = @transform_3, window_bounds = array<i64: 1, 8, 128>}]} {
    %c0_i32 = arith.constant 0 : i32
    %0 = arith.cmpi eq, %arg1, %c0_i32 : i32
    %1 = arith.extui %0 : i1 to i32
    %c0_i32_0 = arith.constant 0 : i32
    %2 = arith.cmpi ne, %1, %c0_i32_0 : i32
    scf.if %2 {
      %cst_17 = arith.constant 0.000000e+00 : f32
      %20 = vector.broadcast %cst_17 : f32 to vector<8x128xf32>
      %c0_18 = arith.constant 0 : index
      %c0_19 = arith.constant 0 : index
      %21 = vector.load %arg6[%c0_18, %c0_19] : memref<8x128xf32, #tpu.memory_space<vmem>>, vector<8x128xf32>
      tpu.vector_store %arg6[%c0_18, %c0_19], %20 {strides = array<i32>} : memref<8x128xf32, #tpu.memory_space<vmem>>, vector<8x128xf32>,
      %cst_20 = arith.constant 0.000000e+00 : f32
      %22 = vector.broadcast %cst_20 : f32 to vector<8x128xf32>
      %c0_21 = arith.constant 0 : index
      %c0_22 = arith.constant 0 : index
      %23 = vector.load %arg7[%c0_21, %c0_22] : memref<8x128xf32, #tpu.memory_space<vmem>>, vector<8x128xf32>
      tpu.vector_store %arg7[%c0_21, %c0_22], %22 {strides = array<i32>} : memref<8x128xf32, #tpu.memory_space<vmem>>, vector<8x128xf32>,
    } else {
    }
    %cst = arith.constant 1.000000e+00 : f32
    %3 = vector.broadcast %cst : f32 to vector<8x16xf32>
    %c0 = arith.constant 0 : index
    %c0_1 = arith.constant 0 : index
    %4 = vector.load %arg2[%c0, %c0_1] : memref<16x128xf32, #tpu.memory_space<vmem>>, vector<16x128xf32>
    %c0_2 = arith.constant 0 : index
    %c0_3 = arith.constant 0 : index
    %5 = vector.load %arg3[%c0_2, %c0_3] : memref<16x128xf32, #tpu.memory_space<vmem>>, vector<16x128xf32>
    %c0_4 = arith.constant 0 : index
    %c0_5 = arith.constant 0 : index
    %6 = vector.load %arg6[%c0_4, %c0_5] : memref<8x128xf32, #tpu.memory_space<vmem>>, vector<8x128xf32>
    %7 = arith.mulf %4, %5 : vector<16x128xf32>
    %cst_6 = arith.constant dense<0.000000e+00> : vector<8x128xf32>
    %8 = tpu.matmul %3, %7, %cst_6 {dimension_numbers = #tpu.dot_dimension_numbers<[1], [0], [0], [1], [0, 0, 1, 1], [], []>} : vector<8x16xf32>, vector<16x128xf32>, vector<8x128xf32> -> vector<8x128xf32>
    %9 = arith.addf %6, %8 : vector<8x128xf32>
    %c0_7 = arith.constant 0 : index
    %c0_8 = arith.constant 0 : index
    %10 = vector.load %arg6[%c0_7, %c0_8] : memref<8x128xf32, #tpu.memory_space<vmem>>, vector<8x128xf32>
    tpu.vector_store %arg6[%c0_7, %c0_8], %9 {strides = array<i32>} : memref<8x128xf32, #tpu.memory_space<vmem>>, vector<8x128xf32>,
    %c0_9 = arith.constant 0 : index
    %c0_10 = arith.constant 0 : index
    %11 = vector.load %arg7[%c0_9, %c0_10] : memref<8x128xf32, #tpu.memory_space<vmem>>, vector<8x128xf32>
    %cst_11 = arith.constant dense<0.000000e+00> : vector<8x128xf32>
    %12 = tpu.matmul %3, %4, %cst_11 {dimension_numbers = #tpu.dot_dimension_numbers<[1], [0], [0], [1], [0, 0, 1, 1], [], []>} : vector<8x16xf32>, vector<16x128xf32>, vector<8x128xf32> -> vector<8x128xf32>
    %cst_12 = arith.constant dense<0.000000e+00> : vector<8x128xf32>
    %13 = tpu.matmul %3, %5, %cst_12 {dimension_numbers = #tpu.dot_dimension_numbers<[1], [0], [0], [1], [0, 0, 1, 1], [], []>} : vector<8x16xf32>, vector<16x128xf32>, vector<8x128xf32> -> vector<8x128xf32>
    %14 = arith.addf %12, %13 : vector<8x128xf32>
    %15 = arith.addf %11, %14 : vector<8x128xf32>
    %c0_13 = arith.constant 0 : index
    %c0_14 = arith.constant 0 : index
    %16 = vector.load %arg7[%c0_13, %c0_14] : memref<8x128xf32, #tpu.memory_space<vmem>>, vector<8x128xf32>
    tpu.vector_store %arg7[%c0_13, %c0_14], %15 {strides = array<i32>} : memref<8x128xf32, #tpu.memory_space<vmem>>, vector<8x128xf32>,
    %c0_i32_15 = arith.constant 0 : i32
    %17 = arith.cmpi eq, %arg1, %c0_i32_15 : i32
    %18 = arith.extui %17 : i1 to i32
    %c0_i32_16 = arith.constant 0 : i32
    %19 = arith.cmpi ne, %18, %c0_i32_16 : i32
    scf.if %19 {
      %c0_17 = arith.constant 0 : index
      %c0_18 = arith.constant 0 : index
      %20 = vector.load %arg6[%c0_17, %c0_18] : memref<8x128xf32, #tpu.memory_space<vmem>>, vector<8x128xf32>
      %21 = vector.shape_cast %20 : vector<8x128xf32> to vector<1x8x128xf32>
      %c0_19 = arith.constant 0 : index
      %c0_20 = arith.constant 0 : index
      %c0_21 = arith.constant 0 : index
      %22 = vector.load %arg4[%c0_19, %c0_20, %c0_21] : memref<1x8x128xf32, #tpu.memory_space<vmem>>, vector<1x8x128xf32>
      tpu.vector_store %arg4[%c0_19, %c0_20, %c0_21], %21 {strides = array<i32>} : memref<1x8x128xf32, #tpu.memory_space<vmem>>, vector<1x8x128xf32>,
      %c0_22 = arith.constant 0 : index
      %c0_23 = arith.constant 0 : index
      %23 = vector.load %arg7[%c0_22, %c0_23] : memref<8x128xf32, #tpu.memory_space<vmem>>, vector<8x128xf32>
      %24 = vector.shape_cast %23 : vector<8x128xf32> to vector<1x8x128xf32>
      %c0_24 = arith.constant 0 : index
      %c0_25 = arith.constant 0 : index
      %c0_26 = arith.constant 0 : index
      %25 = vector.load %arg5[%c0_24, %c0_25, %c0_26] : memref<1x8x128xf32, #tpu.memory_space<vmem>>, vector<1x8x128xf32>
      tpu.vector_store %arg5[%c0_24, %c0_25, %c0_26], %24 {strides = array<i32>} : memref<1x8x128xf32, #tpu.memory_space<vmem>>, vector<1x8x128xf32>,
    } else {
    }
    return
  }
  func.func @transform_0(%arg0: i32, %arg1: i32) -> (i32, i32) {
    %c1_i32 = arith.constant 1 : i32
    %0 = arith.muli %arg0, %c1_i32 : i32
    %1 = arith.addi %0, %arg1 : i32
    %c0_i32 = arith.constant 0 : i32
    %c0_i32_0 = arith.constant 0 : i32
    return %1, %c0_i32 : i32, i32
  }
  func.func @transform_1(%arg0: i32, %arg1: i32) -> (i32, i32) {
    %c1_i32 = arith.constant 1 : i32
    %0 = arith.muli %arg0, %c1_i32 : i32
    %1 = arith.addi %0, %arg1 : i32
    %c0_i32 = arith.constant 0 : i32
    %c0_i32_0 = arith.constant 0 : i32
    return %1, %c0_i32 : i32, i32
  }
  func.func @transform_2(%arg0: i32, %arg1: i32) -> (i32, i32, i32) {
    %c0_i32 = arith.constant 0 : i32
    %c0_i32_0 = arith.constant 0 : i32
    %c0_i32_1 = arith.constant 0 : i32
    return %arg0, %c0_i32, %c0_i32_0 : i32, i32, i32
  }
  func.func @transform_3(%arg0: i32, %arg1: i32) -> (i32, i32, i32) {
    %c0_i32 = arith.constant 0 : i32
    %c0_i32_0 = arith.constant 0 : i32
    %c0_i32_1 = arith.constant 0 : i32
    return %arg0, %c0_i32, %c0_i32_0 : i32, i32, i32
  }
}

</mosaic_0001>

<bundles_post_ra>
// kernel: dice_loss.1
= control target key start
LH: loop header
LB: loop body
LE: loop exit
PB: predicated region body
PF: predicated region fallthrough
CT: control target
= control target key end

     0   :  { %vm70_vm0 = vcmask 130048   ;;  %v170_v6 = vmov 1.0   ;;  %s209_s0 = inlined_call_operand.vmem [shape: f32[16,128], index: 0, kind: input, shape index: {}]   ;;  %s210_s1 = inlined_call_operand.vmem [shape: f32[16,128], index: 1, kind: input, shape index: {}]   ;;  %s211_s2 = inlined_call_operand.vmem [shape: f32[1,8,128], index: 2, kind: output, shape index: {0}]   ;;  %s212_s3 = inlined_call_operand.vmem [shape: f32[1,8,128], index: 3, kind: output, shape index: {1}]  }
   0x1   :  { %v64_v0 = vld [vmem:[%s209_s0 + $0x8] sm:$0xff]  ;;  %v63_v1 = vld [vmem:[%s209_s0] sm:$0xff] }
   0x2   :  { %v66_v2 = vld [vmem:[%s210_s1 + $0x8] sm:$0xff]  ;;  %131 = vmatpush.msra.mxu2 %v64_v0  ;;  %v65_v4 = vld [vmem:[%s210_s1] sm:$0xff] }
   0x3   :  { %111 = vmatpush.msra.mxu1 %v66_v2  ;;  %v69_v3 = vmul.f32 %v66_v2, %v64_v0  ;;  %v68_v5 = vmul.f32 %v65_v4, %v63_v1 }
   0x4   :  { %132 = vmatpush.msra.mxu2 %v63_v1 }
   0x5   :  { %88 = vmatpush.msra.mxu0 %v69_v3  ;;  %168 = vmatmul.msk.f32.vlgmr.msra.gmra.mxu2 %vm70_vm0, %v170_v6 }
   0x6   :  { %112 = vmatpush.msra.mxu1 %v65_v4 }
   0x7   :  { %167 = vmatmul.msk.f32.vlgmr.msra.gmra.mxu1 %vm70_vm0, %v170_v6  ;;  %89 = vmatpush.msra.mxu0 %v68_v5 }
   0x8   :  { %166 = vmatmul.msk.f32.vlgmr.msra.gmra.mxu0 %vm70_vm0, %v170_v6 }
  0x84   :  { %v114_v8 = vpop.f32.mrf.mxu1 }
  0x85   :  { %v91_v7 = vpop.f32.mrf.mxu0 }
  0x86   :  { %143 = vst [vmem:[%s211_s2] sm:$0xff] %v91_v7 }
  0x88   :  { %v134_v9 = vpop.f32.mrf.mxu2 }
  0x89   :  { %v135_v10 = vadd.f32 %v134_v9, %v114_v8 }
  0x8b   :  { %145 = vst [vmem:[%s212_s3] sm:$0xff] %v135_v10 }

</bundles_post_ra>
